<compile_context>
chip_gen: v5e
topology: v5e:2x2
jax: 0.10.0
libtpu: 0.0.40
codegen_flags: <defaults>
</compile_context>

<pallas_src>
import functools

import jax
import jax.numpy as jnp
from jax.experimental import pallas as pl
from jax.experimental.pallas import tpu as pltpu

KH = KW = 4
STRIDE = 2
PAD = 1
EPS = 1e-5
NEG_SLOPE = 0.2  # LeakyReLU(0.2)


def _round_up(x, m):
    return ((x + m - 1) // m) * m


def _pick_tile(total, target, unit):
    """Largest multiple of `unit` that divides `total` and is <= max(target, unit)."""
    target = max(unit, target)
    units = total // unit
    best = unit
    for g in range(1, units + 1):
        if units % g == 0 and unit * g <= target:
            best = unit * g
    return best


def _physical_vmem_bytes():
    try:
        info = pltpu.get_tpu_info()
        for attr in ("vmem_capacity_bytes", "vmem_bytes", "vmem_capacity"):
            v = getattr(info, attr, None)
            if v:
                return int(v)
    except Exception:
        pass
    return 64 * 2**20  # conservative: v7x per-TensorCore VMEM


# ---------------- Pallas kernels ----------------

def _conv_bn_stats_kernel(p_ref, w_ref, y_ref, stats_ref, acc_ref, *,
                          tile_m, total_m, mask_rows):
    """Fused conv matmul + per-row-tile BatchNorm partial statistics.

    p_ref: (tm, tk) bf16 patches, w_ref: (tk, tn) bf16 weights,
    y_ref: (tm, tn) bf16 conv output tile,
    stats_ref: (2, tn) f32 [sum; sum of squares] for this (i, j) tile,
    acc_ref: (tm, tn) f32 accumulator scratch (reduction over the K axis).
    """
    k = pl.program_id(2)

    @pl.when(k == 0)
    def _init():
        acc_ref[...] = jnp.zeros_like(acc_ref)

    acc_ref[...] += jnp.dot(p_ref[...], w_ref[...],
                            preferred_element_type=jnp.float32)

    @pl.when(k == pl.num_programs(2) - 1)
    def _finalize():
        acc = acc_ref[...]
        y_ref[...] = acc.astype(y_ref.dtype)
        if mask_rows:
            # The last row tile hangs past the true M; drop those rows from
            # the statistics (their y values are discarded by the wrapper).
            row = jax.lax.broadcasted_iota(jnp.int32, acc.shape, 0)
            valid = (pl.program_id(0) * tile_m + row) < total_m
            acc = jnp.where(valid, acc, 0.0)
        stats_ref[0:1, :] = jnp.sum(acc, axis=0, keepdims=True)
        stats_ref[1:2, :] = jnp.sum(acc * acc, axis=0, keepdims=True)


def _bn_act_kernel(y_ref, scale_ref, shift_ref, o_ref, *, slope):
    """z = y * scale + shift, then LeakyReLU(slope). Pure FMA + select."""
    z = y_ref[...].astype(jnp.float32) * scale_ref[...] + shift_ref[...]
    o_ref[...] = jnp.where(z >= 0, z, slope * z).astype(o_ref.dtype)


# ---------------- wrapper ----------------

def cnn_block_gen_forward(x, weight, gamma, beta, *, tm=512, tn=None, tk=1024,
                          act="LeakyReLU", out_dtype=jnp.float32,
                          nhwc_in=False, nhwc_out=False, patch_buffers=2):
    """Forward pass of CNN_block_gen (upscale=False, use_dropout=False).

    x: (N, Cin, H, W) unless nhwc_in, weight: (Cout, Cin, 4, 4) PyTorch layout,
    gamma/beta: (Cout,) BatchNorm affine parameters.
    """
    # Cast first so the transpose / reflect-pad / im2col glue moves bf16 bytes.
    xb = x.astype(jnp.bfloat16)
    if nhwc_in:
        N, H, W, Cin = x.shape
        x_nhwc = xb
    else:
        N, Cin, H, W = x.shape
        x_nhwc = jnp.transpose(xb, (0, 2, 3, 1))

    Cout = weight.shape[0]
    OH = (H + 2 * PAD - KH) // STRIDE + 1
    OW = (W + 2 * PAD - KW) // STRIDE + 1
    M = N * OH * OW

    # K padding folded into a cheap zero-pad of the input channels: Cin ->
    # multiple of 8 so K = 16*Cin_pad is a multiple of 128 (MXU-friendly,
    # lane-dense patch tiles, no patch-matrix pad needed).
    Cin_pad = max(8, _round_up(Cin, 8))
    Kp = KH * KW * Cin_pad

    Cp = _round_up(Cout, 128)

    # ---- tile sizes ----
    tn_target = Cp if (tn is None and Cp <= 1024) else (tn if tn is not None else 512)
    tn_eff = _pick_tile(Cp, tn_target, 128)     # grid_n == 1 whenever it fits
    grid_n = Cp // tn_eff

    tk_eff = _pick_tile(Kp, max(128, tk), 128)
    grid_k = Kp // tk_eff

    tm_eff = max(8, min(_round_up(tm, 8), _round_up(M, 8)))
    if M < 8:
        tm_eff = M                               # block == full dim
    grid_m = pl.cdiv(M, tm_eff)
    if grid_m == 1 and M >= 16:
        # v7x megacore: make sure the "parallel" M axis has >= 2 tiles.
        tm_eff = _round_up(pl.cdiv(M, 2), 8)
        grid_m = pl.cdiv(M, tm_eff)
    mask_rows = (grid_m * tm_eff != M)

    # ---- XLA glue: channel pad + NHWC reflect pad + im2col (all bf16) ----
    if Cin_pad != Cin:
        x_nhwc = jnp.pad(x_nhwc, ((0, 0), (0, 0), (0, 0), (0, Cin_pad - Cin)))
    xp = jnp.pad(x_nhwc, ((0, 0), (PAD, PAD), (PAD, PAD), (0, 0)), mode="reflect")

    slices = []
    for kh in range(KH):
        for kw in range(KW):
            sl = xp[:, kh: kh + STRIDE * (OH - 1) + 1: STRIDE,
                    kw: kw + STRIDE * (OW - 1) + 1: STRIDE, :]
            slices.append(sl)                                  # (N, OH, OW, Cin_pad)
    patches = jnp.stack(slices, axis=3).reshape(M, Kp)         # tap-major, cin-minor

    # weights: (Cout, Cin, KH, KW) -> (KH, KW, Cin_pad, Cout) -> (Kp, Cp)
    w_t = jnp.transpose(weight, (2, 3, 1, 0)).astype(jnp.bfloat16)
    if Cin_pad != Cin:
        w_t = jnp.pad(w_t, ((0, 0), (0, 0), (0, Cin_pad - Cin), (0, 0)))
    w_flat = w_t.reshape(Kp, Cout)
    if Cp != Cout:
        w_flat = jnp.pad(w_flat, ((0, 0), (0, Cp - Cout)))

    gamma_p = gamma.astype(jnp.float32)
    beta_p = beta.astype(jnp.float32)
    if Cp != Cout:
        gamma_p = jnp.pad(gamma_p, (0, Cp - Cout))
        beta_p = jnp.pad(beta_p, (0, Cp - Cout))

    # ---- VMEM budget, clamped to physical VMEM (v7x has only 64 MiB) ----
    n_patch_buf = max(2, int(patch_buffers))
    conv_vmem_bytes = (n_patch_buf * tm_eff * tk_eff * 2 +   # patches (bf16)
                       2 * tk_eff * tn_eff * 2 +             # weights (bf16)
                       2 * tm_eff * tn_eff * 2 +             # y out   (bf16)
                       2 * 2 * tn_eff * 4 +                  # stats out
                       tm_eff * tn_eff * 4)                  # acc scratch
    vmem_cap = _physical_vmem_bytes()
    vmem_limit = int(min(max(32 * 2**20, conv_vmem_bytes + (8 << 20)),
                         (vmem_cap * 3) // 4))

    if n_patch_buf > 2:   # optional deeper pipelining of the patch DMA (v5e)
        p_spec = pl.BlockSpec((tm_eff, tk_eff), lambda i, j, k: (i, k),
                              pipeline_mode=pl.Buffered(n_patch_buf))
    else:
        p_spec = pl.BlockSpec((tm_eff, tk_eff), lambda i, j, k: (i, k))

    # ---- fused conv matmul + BN partial statistics (single patch-stream read) ----
    y, part_stats = pl.pallas_call(
        functools.partial(_conv_bn_stats_kernel, tile_m=tm_eff, total_m=M,
                          mask_rows=mask_rows),
        out_shape=(jax.ShapeDtypeStruct((M, Cp), jnp.bfloat16),
                   jax.ShapeDtypeStruct((grid_m, 2, Cp), jnp.float32)),
        grid_spec=pltpu.PrefetchScalarGridSpec(
            num_scalar_prefetch=0,
            grid=(grid_m, grid_n, grid_k),
            in_specs=[p_spec,
                      pl.BlockSpec((tk_eff, tn_eff), lambda i, j, k: (k, j))],
            out_specs=[pl.BlockSpec((tm_eff, tn_eff), lambda i, j, k: (i, j)),
                       pl.BlockSpec((None, 2, tn_eff), lambda i, j, k: (i, 0, j))],
            scratch_shapes=[pltpu.VMEM((tm_eff, tn_eff), jnp.float32)]),
        compiler_params=pltpu.CompilerParams(
            dimension_semantics=("parallel", "parallel", "arbitrary"),
            vmem_limit_bytes=vmem_limit),
    )(patches, w_flat)

    # ---- tiny (2, Cp) reduction + fold BN into scale/shift (f32) ----
    # NOTE: E[x^2]-E[x]^2 in f32 can cancel if |mean| >> std; acceptable for
    # typical GAN activations (see review), kept for a single-pass kernel.
    tot = jnp.sum(part_stats, axis=0)                  # (2, Cp)
    mean = tot[0] / M
    var = jnp.maximum(tot[1] / M - mean * mean, 0.0)   # biased var (training BN)
    inv = jax.lax.rsqrt(var + EPS)
    scale = gamma_p * inv                              # (Cp,)
    shift = beta_p - mean * scale                      # (Cp,)

    # ---- normalize + affine + LeakyReLU epilogue ----
    slope = 0.0 if str(act).lower() == "relu" else NEG_SLOPE
    alias = {0: 0} if jnp.dtype(out_dtype) == jnp.dtype(jnp.bfloat16) else {}
    out_flat = pl.pallas_call(
        functools.partial(_bn_act_kernel, slope=slope),
        out_shape=jax.ShapeDtypeStruct((M, Cp), out_dtype),
        grid_spec=pltpu.PrefetchScalarGridSpec(
            num_scalar_prefetch=0, grid=(grid_m,),
            in_specs=[pl.BlockSpec((tm_eff, Cp), lambda i: (i, 0)),
                      pl.BlockSpec((1, Cp), lambda i: (0, 0)),
                      pl.BlockSpec((1, Cp), lambda i: (0, 0))],
            out_specs=pl.BlockSpec((tm_eff, Cp), lambda i: (i, 0))),
        compiler_params=pltpu.CompilerParams(
            dimension_semantics=("parallel",),
            vmem_limit_bytes=vmem_limit),
        input_output_aliases=alias,
    )(y, scale.reshape(1, Cp), shift.reshape(1, Cp))

    # TODO(synk): upscale=True (ConvTranspose2d) and use_dropout=True
    # (nn.Dropout(0.5)) paths of CNN_block_gen are not implemented; the module
    # defaults are upscale=False / use_dropout=False.
    # TODO(synk): for NCHW consumers, a fully fused path would transpose the
    # (tm, Cp) tile in the epilogue (XLU) and emit channel-major output
    # directly, removing the XLA transpose below.
    if Cp != Cout:
        out_flat = out_flat[:, :Cout]
    out = out_flat.reshape(N, OH, OW, Cout)
    if nhwc_out:
        return out
    return jnp.transpose(out, (0, 3, 1, 2))            # back to NCHW


# ---------------- pure-JAX reference for sanity check ----------------

def _reference(x_nchw, weight, gamma, beta):
    x = x_nchw.astype(jnp.float32)
    xp = jnp.pad(x, ((0, 0), (0, 0), (PAD, PAD), (PAD, PAD)), mode="reflect")
    y = jax.lax.conv_general_dilated(
        xp, weight.astype(jnp.float32), window_strides=(STRIDE, STRIDE),
        padding="VALID", dimension_numbers=("NCHW", "OIHW", "NCHW"))
    mean = jnp.mean(y, axis=(0, 2, 3), keepdims=True)
    var = jnp.var(y, axis=(0, 2, 3), keepdims=True)
    z = (y - mean) * jax.lax.rsqrt(var + EPS)
    z = z * gamma.reshape(1, -1, 1, 1) + beta.reshape(1, -1, 1, 1)
    return jnp.where(z >= 0, z, NEG_SLOPE * z)


if __name__ == "__main__":
    key = jax.random.PRNGKey(0)
    k_x, k_w = jax.random.split(key)

    N, Cin, H, W = 2, 4, 16, 16
    Cout = 8

    x = jax.random.normal(k_x, (N, Cin, H, W), dtype=jnp.float32)
    # deterministic "kaiming-ish" weight init; BN affine gamma=1, beta=0
    w_std = (2.0 / (Cin * KH * KW)) ** 0.5
    weight = jax.random.normal(k_w, (Cout, Cin, KH, KW), dtype=jnp.float32) * w_std
    gamma = jnp.ones((Cout,), jnp.float32)
    beta = jnp.zeros((Cout,), jnp.float32)

    fwd = jax.jit(cnn_block_gen_forward)
    out = jax.block_until_ready(fwd(x, weight, gamma, beta))

    ref = jax.block_until_ready(_reference(x, weight, gamma, beta))
    max_diff = float(jnp.max(jnp.abs(out - ref)))
    assert out.shape == (N, Cout, H // 2, W // 2), out.shape
    assert out.dtype == jnp.float32, out.dtype
    assert max_diff < 5e-2, f"mismatch vs reference: {max_diff}"

    print("KERNEL_OK")
</pallas_src>

<mosaic_0001>
module attributes {stable_mosaic.version = 11 : i64} {
  func.func @_conv_bn_stats_kernel(%arg0: i32, %arg1: i32, %arg2: i32, %arg3: memref<64x128xbf16, #tpu.memory_space<vmem>>, %arg4: memref<128x128xbf16, #tpu.memory_space<vmem>>, %arg5: memref<64x128xbf16, #tpu.memory_space<vmem>>, %arg6: memref<1x2x128xf32, #tpu.memory_space<vmem>>, %arg7: memref<64x128xf32, #tpu.memory_space<vmem>>) attributes {dimension_semantics = [#tpu.dimension_semantics<parallel>, #tpu.dimension_semantics<parallel>, #tpu.dimension_semantics<arbitrary>], iteration_bounds = array<i64: 2, 1, 1>, scalar_prefetch = 0 : i64, scratch_operands = 1 : i64, tpu.core_type = #tpu.core_type<tc>, window_params = [{transform_indices = @transform_0, window_bounds = array<i64: 64, 128>}, {transform_indices = @transform_1, window_bounds = array<i64: 128, 128>}, {transform_indices = @transform_2, window_bounds = array<i64: 64, 128>}, {transform_indices = @transform_3, window_bounds = array<i64: 1, 2, 128>}]} {
    %c0_i32 = arith.constant 0 : i32
    %0 = arith.cmpi eq, %arg2, %c0_i32 : i32
    %1 = arith.extui %0 : i1 to i32
    %c0_i32_0 = arith.constant 0 : i32
    %2 = arith.cmpi ne, %1, %c0_i32_0 : i32
    scf.if %2 {
      %cst_10 = arith.constant 0.000000e+00 : f32
      %12 = vector.broadcast %cst_10 : f32 to vector<64x128xf32>
      %c0_11 = arith.constant 0 : index
      %c0_12 = arith.constant 0 : index
      %13 = vector.load %arg7[%c0_11, %c0_12] : memref<64x128xf32, #tpu.memory_space<vmem>>, vector<64x128xf32>
      tpu.vector_store %arg7[%c0_11, %c0_12], %12 {strides = array<i32>} : memref<64x128xf32, #tpu.memory_space<vmem>>, vector<64x128xf32>,
    } else {
    }
    %c0 = arith.constant 0 : index
    %c0_1 = arith.constant 0 : index
    %3 = vector.load %arg7[%c0, %c0_1] : memref<64x128xf32, #tpu.memory_space<vmem>>, vector<64x128xf32>
    %c0_2 = arith.constant 0 : index
    %c0_3 = arith.constant 0 : index
    %4 = vector.load %arg3[%c0_2, %c0_3] : memref<64x128xbf16, #tpu.memory_space<vmem>>, vector<64x128xbf16>
    %c0_4 = arith.constant 0 : index
    %c0_5 = arith.constant 0 : index
    %5 = vector.load %arg4[%c0_4, %c0_5] : memref<128x128xbf16, #tpu.memory_space<vmem>>, vector<128x128xbf16>
    %cst = arith.constant dense<0.000000e+00> : vector<64x128xf32>
    %6 = tpu.matmul %4, %5, %cst {dimension_numbers = #tpu.dot_dimension_numbers<[1], [0], [0], [1], [0, 0, 1, 1], [], []>} : vector<64x128xbf16>, vector<128x128xbf16>, vector<64x128xf32> -> vector<64x128xf32>
    %7 = arith.addf %3, %6 : vector<64x128xf32>
    %c0_6 = arith.constant 0 : index
    %c0_7 = arith.constant 0 : index
    %8 = vector.load %arg7[%c0_6, %c0_7] : memref<64x128xf32, #tpu.memory_space<vmem>>, vector<64x128xf32>
    tpu.vector_store %arg7[%c0_6, %c0_7], %7 {strides = array<i32>} : memref<64x128xf32, #tpu.memory_space<vmem>>, vector<64x128xf32>,
    %c0_i32_8 = arith.constant 0 : i32
    %9 = arith.cmpi eq, %arg2, %c0_i32_8 : i32
    %10 = arith.extui %9 : i1 to i32
    %c0_i32_9 = arith.constant 0 : i32
    %11 = arith.cmpi ne, %10, %c0_i32_9 : i32
    scf.if %11 {
      %c0_10 = arith.constant 0 : index
      %c0_11 = arith.constant 0 : index
      %12 = vector.load %arg7[%c0_10, %c0_11] : memref<64x128xf32, #tpu.memory_space<vmem>>, vector<64x128xf32>
      %13 = arith.truncf %12 : vector<64x128xf32> to vector<64x128xbf16>
      %c0_12 = arith.constant 0 : index
      %c0_13 = arith.constant 0 : index
      %14 = vector.load %arg5[%c0_12, %c0_13] : memref<64x128xbf16, #tpu.memory_space<vmem>>, vector<64x128xbf16>
      tpu.vector_store %arg5[%c0_12, %c0_13], %13 {strides = array<i32>} : memref<64x128xbf16, #tpu.memory_space<vmem>>, vector<64x128xbf16>,
      %cst_14 = arith.constant dense<0.000000e+00> : vector<128xf32>
      %15 = vector.multi_reduction <add>, %12, %cst_14 [0] : vector<64x128xf32> to vector<128xf32>
      %16 = vector.shape_cast %15 : vector<128xf32> to vector<1x128xf32>
      %c0_15 = arith.constant 0 : index
      %c0_16 = arith.constant 0 : index
      %c0_17 = arith.constant 0 : index
      %17 = vector.load %arg6[%c0_15, %c0_16, %c0_17] : memref<1x2x128xf32, #tpu.memory_space<vmem>>, vector<1x1x128xf32>
      %18 = vector.shape_cast %17 : vector<1x1x128xf32> to vector<1x128xf32>
      %19 = vector.shape_cast %16 : vector<1x128xf32> to vector<1x1x128xf32>
      tpu.vector_store %arg6[%c0_15, %c0_16, %c0_17], %19 {strides = array<i32>} : memref<1x2x128xf32, #tpu.memory_space<vmem>>, vector<1x1x128xf32>,
      %20 = arith.mulf %12, %12 : vector<64x128xf32>
      %cst_18 = arith.constant dense<0.000000e+00> : vector<128xf32>
      %21 = vector.multi_reduction <add>, %20, %cst_18 [0] : vector<64x128xf32> to vector<128xf32>
      %22 = vector.shape_cast %21 : vector<128xf32> to vector<1x128xf32>
      %c0_19 = arith.constant 0 : index
      %c1 = arith.constant 1 : index
      %c0_20 = arith.constant 0 : index
      %23 = vector.load %arg6[%c0_19, %c1, %c0_20] : memref<1x2x128xf32, #tpu.memory_space<vmem>>, vector<1x1x128xf32>
      %24 = vector.shape_cast %23 : vector<1x1x128xf32> to vector<1x128xf32>
      %25 = vector.shape_cast %22 : vector<1x128xf32> to vector<1x1x128xf32>
      tpu.vector_store %arg6[%c0_19, %c1, %c0_20], %25 {strides = array<i32>} : memref<1x2x128xf32, #tpu.memory_space<vmem>>, vector<1x1x128xf32>,
    } else {
    }
    return
  }
  func.func @transform_0(%arg0: i32, %arg1: i32, %arg2: i32) -> (i32, i32) {
    %c0_i32 = arith.constant 0 : i32
    return %arg0, %arg2 : i32, i32
  }
  func.func @transform_1(%arg0: i32, %arg1: i32, %arg2: i32) -> (i32, i32) {
    %c0_i32 = arith.constant 0 : i32
    return %arg2, %arg1 : i32, i32
  }
  func.func @transform_2(%arg0: i32, %arg1: i32, %arg2: i32) -> (i32, i32) {
    %c0_i32 = arith.constant 0 : i32
    return %arg0, %arg1 : i32, i32
  }
  func.func @transform_3(%arg0: i32, %arg1: i32, %arg2: i32) -> (i32, i32, i32) {
    %c0_i32 = arith.constant 0 : i32
    %c0_i32_0 = arith.constant 0 : i32
    return %arg0, %c0_i32, %arg1 : i32, i32, i32
  }
}

module attributes {stable_mosaic.version = 11 : i64} {
  func.func @_bn_act_kernel(%arg0: i32, %arg1: memref<64x128xbf16, #tpu.memory_space<vmem>>, %arg2: memref<1x128xf32, #tpu.memory_space<vmem>>, %arg3: memref<1x128xf32, #tpu.memory_space<vmem>>, %arg4: memref<64x128xf32, #tpu.memory_space<vmem>>) attributes {dimension_semantics = [#tpu.dimension_semantics<parallel>], iteration_bounds = array<i64: 2>, scalar_prefetch = 0 : i64, scratch_operands = 0 : i64, tpu.core_type = #tpu.core_type<tc>, window_params = [{transform_indices = @transform_0, window_bounds = array<i64: 64, 128>}, {pipeline_mode = #tpu.pipeline_mode<synchronous>, transform_indices = @transform_1, window_bounds = array<i64: 1, 128>}, {pipeline_mode = #tpu.pipeline_mode<synchronous>, transform_indices = @transform_2, window_bounds = array<i64: 1, 128>}, {transform_indices = @transform_3, window_bounds = array<i64: 64, 128>}]} {
    %c0 = arith.constant 0 : index
    %c0_0 = arith.constant 0 : index
    %0 = vector.load %arg1[%c0, %c0_0] : memref<64x128xbf16, #tpu.memory_space<vmem>>, vector<64x128xbf16>
    %1 = arith.extf %0 : vector<64x128xbf16> to vector<64x128xf32>
    %c0_1 = arith.constant 0 : index
    %c0_2 = arith.constant 0 : index
    %2 = vector.load %arg2[%c0_1, %c0_2] : memref<1x128xf32, #tpu.memory_space<vmem>>, vector<1x128xf32>
    %3 = vector.broadcast %2 : vector<1x128xf32> to vector<64x128xf32>
    %4 = arith.mulf %1, %3 : vector<64x128xf32>
    %c0_3 = arith.constant 0 : index
    %c0_4 = arith.constant 0 : index
    %5 = vector.load %arg3[%c0_3, %c0_4] : memref<1x128xf32, #tpu.memory_space<vmem>>, vector<1x128xf32>
    %6 = vector.broadcast %5 : vector<1x128xf32> to vector<64x128xf32>
    %7 = arith.addf %4, %6 : vector<64x128xf32>
    %cst = arith.constant 0.000000e+00 : f32
    %8 = vector.broadcast %cst : f32 to vector<64x128xf32>
    %9 = arith.cmpf oge, %7, %8 : vector<64x128xf32>
    %cst_5 = arith.constant 2.000000e-01 : f32
    %10 = vector.broadcast %cst_5 : f32 to vector<64x128xf32>
    %11 = arith.mulf %10, %7 : vector<64x128xf32>
    %12 = arith.select %9, %7, %11 : vector<64x128xi1>, vector<64x128xf32>
    %c0_6 = arith.constant 0 : index
    %c0_7 = arith.constant 0 : index
    %13 = vector.load %arg4[%c0_6, %c0_7] : memref<64x128xf32, #tpu.memory_space<vmem>>, vector<64x128xf32>
    tpu.vector_store %arg4[%c0_6, %c0_7], %12 {strides = array<i32>} : memref<64x128xf32, #tpu.memory_space<vmem>>, vector<64x128xf32>,
    return
  }
  func.func @transform_0(%arg0: i32) -> (i32, i32) {
    %c0_i32 = arith.constant 0 : i32
    %c0_i32_0 = arith.constant 0 : i32
    return %arg0, %c0_i32 : i32, i32
  }
  func.func @transform_1(%arg0: i32) -> (i32, i32) {
    %c0_i32 = arith.constant 0 : i32
    %c0_i32_0 = arith.constant 0 : i32
    %c0_i32_1 = arith.constant 0 : i32
    return %c0_i32, %c0_i32_0 : i32, i32
  }
  func.func @transform_2(%arg0: i32) -> (i32, i32) {
    %c0_i32 = arith.constant 0 : i32
    %c0_i32_0 = arith.constant 0 : i32
    %c0_i32_1 = arith.constant 0 : i32
    return %c0_i32, %c0_i32_0 : i32, i32
  }
  func.func @transform_3(%arg0: i32) -> (i32, i32) {
    %c0_i32 = arith.constant 0 : i32
    %c0_i32_0 = arith.constant 0 : i32
    return %arg0, %c0_i32 : i32, i32
  }
}

</mosaic_0001>

<bundles_post_ra>
// kernel: cnn_block_gen_forward.3
= control target key start
LH: loop header
LB: loop body
LE: loop exit
PB: predicated region body
PF: predicated region fallthrough
CT: control target
= control target key end

     0   :  { %s370_s12 = smov 0   ;;  %s407_s0 = inlined_call_operand.vmem [shape: bf16[128,128], index: 0, kind: input, shape index: {}]   ;;  %s408_s1 = inlined_call_operand.vmem [shape: f32[1,128], index: 1, kind: input, shape index: {}]   ;;  %s409_s2 = inlined_call_operand.vmem [shape: f32[1,128], index: 2, kind: input, shape index: {}]   ;;  %s410_s3 = inlined_call_operand.vmem [shape: f32[128,128], index: 3, kind: output, shape index: {}]  }
   0x1 LB: > { %s302_s13 = sadd.s32 4294967295, %s348_s12   ;;  %p306_p0 = scmp.ge.s32.totalorder %s348_s12, 1  ;;  %s348_s12 = sphi %s370_s12, %s13_s12  }
   0x2   : > { %p138_p1 = scmp.lt.s32.totalorder %s348_s12, 3 }
   0x4   : > { %p139_p2 = pnand %p306_p0, %p138_p1 }
   0x5   : > { %s307_s14 = sshll.u32 (!%p139_p2), %s302_s13, 3 }
   0x6   : > { %142 = sbr.rel (%p139_p2) target bundleno = 32 (0x20), region = 32  ;;  %p163_p3 = scmp.lt.s32.totalorder (!%p139_p2), %s307_s14, 15 }
   0xb   : > { %s412_s14 = smov (!%p163_p3, %s307_s14), 15  ;;  %v340_v0 = vld [vmem:[%s408_s1] ss:$0 sm:$0xff] }
   0xc   : > { %s308_s15 = sshll.u32 %s412_s14, 2  ;;  %v341_v5 = vld [vmem:[%s409_s2] ss:$0 sm:$0xff]  ;;  %s310_s23 = sshll.u32 %s412_s14, 3 }
   0xd   : > { %s166_s18 = scalar_lea.vmem %s407_s0, %s308_s15  ;;  %s394_s26 = scalar_lea.vmem %s410_s3, %s310_s23 }
   0xe   : > { %v314_v1 = vld [vmem:[%s166_s18] sm:$0xff]   ;;  %v329_v2 = vld [vmem:[%s166_s18 + $0x8] sm:$0xff]   ;;  %v330_v3 = vld [vmem:[%s166_s18 + $0x10] sm:$0xff]  }
   0xf   : > { %v315_v4 = vunpack.c.l.bf16 %v314_v1  ;;  %v316_v6 = vunpack.c.h.bf16 %v314_v1  ;;  %v319_v7 = vunpack.c.l.bf16 %v329_v2  ;;  %v320_v8 = vunpack.c.h.bf16 %v329_v2  ;;  %v331_v9 = vld [vmem:[%s166_s18 + $0x18] sm:$0xff]  }
  0x10   : > { %v323_v10 = vunpack.c.l.bf16 %v330_v3  ;;  %v324_v11 = vunpack.c.h.bf16 %v330_v3  ;;  %v327_v12 = vunpack.c.l.bf16 %v331_v9  ;;  %v328_v13 = vunpack.c.h.bf16 %v331_v9 }
  0x11   : > { %v194_v14 = vmul.f32 %v340_v0, %v315_v4  ;;  %v195_v15 = vmul.f32 %v340_v0, %v316_v6  ;;  %v196_v16 = vmul.f32 %v340_v0, %v319_v7  ;;  %v197_v17 = vmul.f32 %v340_v0, %v320_v8 }
  0x12   : > { %v198_v18 = vmul.f32 %v340_v0, %v323_v10  ;;  %v199_v19 = vmul.f32 %v340_v0, %v324_v11  ;;  %v200_v20 = vmul.f32 %v340_v0, %v327_v12  ;;  %v201_v21 = vmul.f32 %v340_v0, %v328_v13 }
  0x13   : > { %v206_v22 = vadd.f32 %v341_v5, %v194_v14  ;;  %v207_v23 = vadd.f32 %v341_v5, %v195_v15  ;;  %v208_v24 = vadd.f32 %v341_v5, %v196_v16  ;;  %v209_v25 = vadd.f32 %v341_v5, %v197_v17 }
  0x14   : > { %v210_v26 = vadd.f32 %v341_v5, %v198_v18  ;;  %v211_v27 = vadd.f32 %v341_v5, %v199_v19  ;;  %v212_v28 = vadd.f32 %v341_v5, %v200_v20  ;;  %v213_v29 = vadd.f32 %v341_v5, %v201_v21 }
  0x15   : > { %vm214_vm0 = vcmp.ge.f32.partialorder %v206_v22, 0.0  ;;  %v222_v30 = vmul.f32 0.2, %v206_v22  ;;  %vm215_vm1 = vcmp.ge.f32.partialorder %v207_v23, 0.0  ;;  %v223_v31 = vmul.f32 0.2, %v207_v23 }
  0x16   : > { %vm216_vm2 = vcmp.ge.f32.partialorder %v208_v24, 0.0  ;;  %v224_v32 = vmul.f32 0.2, %v208_v24  ;;  %vm217_vm3 = vcmp.ge.f32.partialorder %v209_v25, 0.0  ;;  %v225_v33 = vmul.f32 0.2, %v209_v25 }
  0x17   : > { %v230_v34 = vsel %vm214_vm0, %v206_v22, %v222_v30  ;;  %v231_v35 = vsel %vm215_vm1, %v207_v23, %v223_v31  ;;  %vm218_vm4 = vcmp.ge.f32.partialorder %v210_v26, 0.0  ;;  %v226_v36 = vmul.f32 0.2, %v210_v26 }
  0x18   : > { %238 = vst [vmem:[%s394_s26] sm:$0xff] %v230_v34  ;;  %v232_v37 = vsel %vm216_vm2, %v208_v24, %v224_v32  ;;  %v233_v38 = vsel %vm217_vm3, %v209_v25, %v225_v33  ;;  %vm219_vm5 = vcmp.ge.f32.partialorder %v211_v27, 0.0  ;;  %v227_v39 = vmul.f32 0.2, %v211_v27 }
  0x19   : > { %239 = vst [vmem:[%s394_s26 + $0x8] sm:$0xff] %v231_v35  ;;  %v234_v40 = vsel %vm218_vm4, %v210_v26, %v226_v36  ;;  %vm220_vm6 = vcmp.ge.f32.partialorder %v212_v28, 0.0  ;;  %v228_v41 = vmul.f32 0.2, %v212_v28  ;;  %vm221_vm7 = vcmp.ge.f32.partialorder %v213_v29, 0.0 }
  0x1a   : > { %240 = vst [vmem:[%s394_s26 + $0x10] sm:$0xff] %v232_v37  ;;  %v235_v42 = vsel %vm219_vm5, %v211_v27, %v227_v39  ;;  %v229_v43 = vmul.f32 0.2, %v213_v29 }
  0x1b   : > { %241 = vst [vmem:[%s394_s26 + $0x18] sm:$0xff] %v233_v38  ;;  %v236_v44 = vsel %vm220_vm6, %v212_v28, %v228_v41 }
  0x1c   : > { %242 = vst [vmem:[%s394_s26 + $0x20] sm:$0xff] %v234_v40  ;;  %v237_v45 = vsel %vm221_vm7, %v213_v29, %v229_v43 }
  0x1d   : > { %243 = vst [vmem:[%s394_s26 + $0x28] sm:$0xff] %v235_v42 }
  0x1e   : > { %244 = vst [vmem:[%s394_s26 + $0x30] sm:$0xff] %v236_v44 }
  0x1f   : > { %245 = vst [vmem:[%s394_s26 + $0x38] sm:$0xff] %v237_v45 }
  0x20 PF: > { %s13_s12 = sadd.s32 1, %s348_s12  }
  0x21   : > { %p10_p4 = scmp.ge.s32.totalorder %s13_s12, 4  }
  0x23   :  { %12 = sbr.rel (!%p10_p4) target bundleno = 1 (0x1), region = 62 }

// kernel: cnn_block_gen_forward.2
= control target key start
LH: loop header
LB: loop body
LE: loop exit
PB: predicated region body
PF: predicated region fallthrough
CT: control target
= control target key end

     0   :  { %s816_s12 = smov 0   ;;  %s818_s13 = smov 0   ;;  %s884_s0 = inlined_call_operand.vmem [shape: bf16[128,128], index: 0, kind: input, shape index: {}]   ;;  %s885_s1 = inlined_call_operand.vmem [shape: bf16[128,128], index: 1, kind: input, shape index: {}]   ;;  %s886_s2 = inlined_call_operand.vmem [shape: bf16[128,128], index: 2, kind: output, shape index: {0}]   ;;  %s887_s3 = inlined_call_operand.vmem [shape: f32[2,2,128], index: 3, kind: output, shape index: {1}]  }
   0x1   :  { %s820_s14 = smov 0  }
   0x2 LB: > { %s33_s15 = sadd.s32 1, %s790_s13  ;;  %p633_p0 = scmp.ge.s32.totalorder %s794_s14, 1  ;;  %s794_s14 = sphi %s820_s14, %s14_s14   ;;  %s790_s13 = sphi %s818_s13, %s889_s13   ;;  %s786_s12 = sphi %s816_s12, %s888_s12  }
   0x3   : > { %p35_p1 = scmp.ge.s32.totalorder %s33_s15, 2  ;;  %p185_p2 = scmp.lt.s32.totalorder %s794_s14, 3 }
   0x5   : > { %s891_s15 = smov (%p35_p1, %s33_s15), 0  ;;  %p186_p3 = pnand %p633_p0, %p185_p2 }
   0x6   : > { %s634_s24 = sshll.u32 (!%p186_p3), %s786_s12, 3  ;;  %p257_p5 = scmp.lt.s32.totalorder (!%p186_p3), %s786_s12, 1 }
   0x7   : > { %189 = sbr.rel (%p186_p3) target bundleno = 207 (0xcf), region = 28  ;;  %p231_p4 = scmp.lt.s32.totalorder (!%p186_p3), %s634_s24, 15 }
   0xc   : > { %v700_v0 = vld [vmem:[%s885_s1 + $0x38] sm:$0xff]  ;;  %v699_v1 = vld [vmem:[%s885_s1 + $0x30] sm:$0xff]  ;;  %v698_v2 = vld [vmem:[%s885_s1 + $0x28] sm:$0xff]  ;;  %s893_s24 = smov (!%p231_p4, %s634_s24), 15  ;;  %s895_s12 = smov (!%p257_p5, %s786_s12), 1 }
   0xd   : > { %380 = vmatpush.bf16.msra.mxu0 %v700_v0  ;;  %724 = vmatpush.bf16.msra.mxu1 %v700_v0  ;;  %v697_v3 = vld [vmem:[%s885_s1 + $0x20] sm:$0xff]  ;;  %v696_v4 = vld [vmem:[%s885_s1 + $0x18] sm:$0xff]  ;;  %v695_v5 = vld [vmem:[%s885_s1 + $0x10] sm:$0xff]  ;;  %s635_s4 = sshll.u32 %s893_s24, 2  ;;  %s638_s17 = sshll.u32 %s895_s12, 1 }
   0xe   : > { %725 = vmatpush.bf16.msra.mxu2 %v700_v0  ;;  %726 = vmatpush.bf16.msra.mxu3 %v700_v0  ;;  %v694_v6 = vld [vmem:[%s885_s1 + $0x8] sm:$0xff]  ;;  %v693_v7 = vld [vmem:[%s885_s1] sm:$0xff]  ;;  %s237_s9 = scalar_lea.vmem %s884_s0, %s635_s4  ;;  %s255_s16 = scalar_lea.vmem %s886_s2, %s635_s4 }
   0xf   : > { %v689_v8 = vld [vmem:[%s237_s9] sm:$0xff]  ;;  %v690_v9 = vld [vmem:[%s237_s9 + $0x8] sm:$0xff]  ;;  %v691_v10 = vld [vmem:[%s237_s9 + $0x10] sm:$0xff]  ;;  %s263_s20 = scalar_lea.vmem %s887_s3, %s638_s17 }
  0x10   : > { %v692_v11 = vld [vmem:[%s237_s9 + $0x18] sm:$0xff] }
  0x11   : > { %381 = vmatpush.bf16.msra.mxu0 %v699_v1  ;;  %727 = vmatpush.bf16.msra.mxu1 %v699_v1 }
  0x12   : > { %728 = vmatpush.bf16.msra.mxu2 %v699_v1  ;;  %729 = vmatpush.bf16.msra.mxu3 %v699_v1 }
  0x15   : > { %382 = vmatpush.bf16.msra.mxu0 %v698_v2  ;;  %730 = vmatpush.bf16.msra.mxu1 %v698_v2 }
  0x16   : > { %731 = vmatpush.bf16.msra.mxu2 %v698_v2  ;;  %732 = vmatpush.bf16.msra.mxu3 %v698_v2 }
  0x19   : > { %383 = vmatpush.bf16.msra.mxu0 %v697_v3  ;;  %733 = vmatpush.bf16.msra.mxu1 %v697_v3 }
  0x1a   : > { %734 = vmatpush.bf16.msra.mxu2 %v697_v3  ;;  %735 = vmatpush.bf16.msra.mxu3 %v697_v3 }
  0x1d   : > { %384 = vmatpush.bf16.msra.mxu0 %v696_v4  ;;  %736 = vmatpush.bf16.msra.mxu1 %v696_v4 }
  0x1e   : > { %737 = vmatpush.bf16.msra.mxu2 %v696_v4  ;;  %738 = vmatpush.bf16.msra.mxu3 %v696_v4 }
  0x21   : > { %385 = vmatpush.bf16.msra.mxu0 %v695_v5  ;;  %739 = vmatpush.bf16.msra.mxu1 %v695_v5 }
  0x22   : > { %740 = vmatpush.bf16.msra.mxu2 %v695_v5  ;;  %741 = vmatpush.bf16.msra.mxu3 %v695_v5 }
  0x25   : > { %386 = vmatpush.bf16.msra.mxu0 %v694_v6  ;;  %742 = vmatpush.bf16.msra.mxu1 %v694_v6 }
  0x26   : > { %743 = vmatpush.bf16.msra.mxu2 %v694_v6  ;;  %744 = vmatpush.bf16.msra.mxu3 %v694_v6 }
  0x29   : > { %387 = vmatpush.bf16.msra.mxu0 %v693_v7  ;;  %745 = vmatpush.bf16.msra.mxu1 %v693_v7 }
  0x2a   : > { %746 = vmatpush.bf16.msra.mxu2 %v693_v7  ;;  %747 = vmatpush.bf16.msra.mxu3 %v693_v7 }
  0x2c   : > { %388 = vmatmul.bf16.vlgmr.msra.gmra.mxu0 %v689_v8  ;;  %393 = vmatmul.bf16.vlgmr.msra.gmra.mxu1 %v690_v9 }
  0x2d   : > { %398 = vmatmul.bf16.vlgmr.msra.gmra.mxu2 %v691_v10  ;;  %403 = vmatmul.bf16.vlgmr.msra.gmra.mxu3 %v692_v11 }
  0xa9   : > { %v389_v12 = vpop.f32.mrf.mxu0  ;;  %v394_v13 = vpop.f32.mrf.mxu1 }
  0xaa   : > { %v466_v16 = vmul.f32 %v389_v12, %v389_v12  ;;  %v468_v23 = vmul.f32 %v394_v13, %v394_v13 }
  0xb0   : > { %v399_v14 = vpop.f32.mrf.mxu2  ;;  %v404_v15 = vpop.f32.mrf.mxu3 }
  0xb1   : > { %v391_v17 = vpop.f32.mrf.mxu0  ;;  %v396_v18 = vpop.f32.mrf.mxu1  ;;  %v470_v29 = vmul.f32 %v399_v14, %v399_v14  ;;  %v472_v39 = vmul.f32 %v404_v15, %v404_v15 }
  0xb2   : > { %v704_v19 = vpack.c.bf16 %v391_v17, %v389_v12  ;;  %v452_v20 = vadd.f32 %v391_v17, %v389_v12  ;;  %v467_v21 = vmul.f32 %v391_v17, %v391_v17  ;;  %v709_v22 = vpack.c.bf16 %v396_v18, %v394_v13 }
  0xb3   : > { %v469_v27 = vmul.f32 %v396_v18, %v396_v18 }
  0xb4   : > { %705 = vst [vmem:[%s255_s16] sm:$0xff] %v704_v19   ;;  %v474_v24 = vadd.f32 %v467_v21, %v466_v16  ;;  %v453_v25 = vadd.f32 %v452_v20, %v394_v13 }
  0xb5   : > { %721 = vst [vmem:[%s255_s16 + $0x8] sm:$0xff] %v709_v22  }
  0xb6   : > { %v454_v26 = vadd.f32 %v453_v25, %v396_v18  ;;  %v475_v28 = vadd.f32 %v474_v24, %v468_v23 }
  0xb8   : > { %v476_v30 = vadd.f32 %v475_v28, %v469_v27  ;;  %v401_v31 = vpop.f32.mrf.mxu2  ;;  %v455_v32 = vadd.f32 %v454_v26, %v399_v14  ;;  %v406_v33 = vpop.f32.mrf.mxu3 }
  0xb9   : > { %v714_v34 = vpack.c.bf16 %v401_v31, %v399_v14  ;;  %v719_v35 = vpack.c.bf16 %v406_v33, %v404_v15  ;;  %v471_v37 = vmul.f32 %v401_v31, %v401_v31  ;;  %v473_v43 = vmul.f32 %v406_v33, %v406_v33 }
  0xba   : > { %v456_v36 = vadd.f32 %v455_v32, %v401_v31  ;;  %v477_v38 = vadd.f32 %v476_v30, %v470_v29 }
  0xbb   : > { %722 = vst [vmem:[%s255_s16 + $0x10] sm:$0xff] %v714_v34  }
  0xbc   : > { %v478_v40 = vadd.f32 %v477_v38, %v471_v37  ;;  %723 = vst [vmem:[%s255_s16 + $0x18] sm:$0xff] %v719_v35   ;;  %v457_v41 = vadd.f32 %v456_v36, %v404_v15 }
  0xbe   : > { %v458_v42 = vadd.f32 %v457_v41, %v406_v33  ;;  %v479_v44 = vadd.f32 %v478_v40, %v472_v39 }
  0xc0   : > { %v459_v45 = vrot.slane %v458_v42, 4  ;;  %v480_v46 = vadd.f32 %v479_v44, %v473_v43 }
  0xc2   : > { %v460_v47 = vadd.f32 %v459_v45, %v458_v42  ;;  %v481_v48 = vrot.slane %v480_v46, 4 }
  0xc4   : > { %v461_v49 = vrot.slane %v460_v47, 2  ;;  %v482_v50 = vadd.f32 %v481_v48, %v480_v46 }
  0xc6   : > { %v462_v51 = vadd.f32 %v461_v49, %v460_v47  ;;  %v483_v52 = vrot.slane %v482_v50, 2 }
  0xc8   : > { %v463_v53 = vrot.slane %v462_v51, 1  ;;  %v484_v54 = vadd.f32 %v483_v52, %v482_v50 }
  0xca   : > { %v464_v55 = vadd.f32 %v463_v53, %v462_v51  ;;  %v485_v56 = vrot.slane %v484_v54, 1 }
  0xcc   : > { %465 = vst [vmem:[%s263_s20] sm:$0x1] %v464_v55  ;;  %v486_v57 = vadd.f32 %v485_v56, %v484_v54 }
  0xce   : > { %487 = vst [vmem:[%s263_s20 + $0x1] sm:$0x1] %v486_v57 }
  0xcf PF: > { %s14_s14 = sadd.s32 1, %s794_s14   ;;  %s888_s12 = smov %s790_s13 }
  0xd0   : > { %p11_p6 = scmp.ge.s32.totalorder %s14_s14, 4   ;;  %s889_s13 = smov %s891_s15 }
  0xd2   :  { %13 = sbr.rel (!%p11_p6) target bundleno = 2 (0x2), region = 81 }

</bundles_post_ra>
